<compile_context>
chip_gen: v7x
topology: tpu7x:2x2x1
jax: 0.10.0
libtpu: 0.0.40
codegen_flags: <defaults>
</compile_context>

<pallas_src>
import functools

import jax
import jax.numpy as jnp
from jax import lax
from jax.experimental import pallas as pl
from jax.experimental.pallas import tpu as pltpu


_SUBLANE_PACK = {4: 8, 2: 16, 1: 32}  # rows per sublane-pack by itemsize


def _target_block_bytes():
    # ~2 MiB/operand is already at the elementwise HBM-roofline plateau on
    # v5e/v6e; on v7x (higher per-TC HBM BW) use 4 MiB to keep per-grid-step
    # overhead ~6%.
    try:
        kind = jax.devices()[0].device_kind.lower()
    except Exception:
        kind = ""
    if "v7" in kind or "tpu7" in kind or "7x" in kind:
        return 4 << 20
    return 2 << 20


def _pick_block(rows, lanes, itemsize, target_bytes):
    """Pick (block_r, block_l) honoring (8,128) tiling, ~target_bytes tiles."""
    pack = _SUBLANE_PACK.get(itemsize, 8)

    # Lane dim: take full rows when they fit the budget or are lane-sparse
    # (L < 128 or L % 128 != 0 -> at most one masked-store edge per row block);
    # otherwise tile in multiples of 128 lanes.
    if lanes < 128 or lanes % 128 != 0 or lanes * itemsize <= target_bytes:
        block_l = lanes
    else:
        budget_l = max(128, (target_bytes // (pack * itemsize) // 128) * 128)
        block_l = min(lanes, budget_l)

    # Row dim: fill the remaining budget, multiple of the dtype's sublane pack.
    budget_rows = max(1, target_bytes // max(1, block_l * itemsize))
    if budget_rows >= rows:
        block_r = rows
    else:
        block_r = min(rows, max(pack, (budget_rows // pack) * pack))

    # Megacore (v7x): if the whole tensor landed in a single grid step, split
    # so there are >= 2 steps and both TensorCores get work.  Harmless on
    # 1-TC chips (one extra ~0.35 us grid step).
    if pl.cdiv(rows, block_r) * pl.cdiv(lanes, block_l) == 1:
        if lanes >= 256:
            block_l = max(128, ((lanes // 2) // 128) * 128)
        elif rows >= 2 * pack:
            block_r = max(pack, ((rows // 2) // pack) * pack)

    return block_r, block_l


def _bent_ident_kernel(x_ref, c_ref, o_ref, *, four_b2, two_b, block_r,
                       use_rsqrt):
    # Per-row coefficients for this row block, sliced out of the small
    # VMEM-resident (R_pad, 2) table (DMA'd once, constant index_map).
    r0 = pl.multiple_of(pl.program_id(0) * block_r, block_r)
    c = c_ref[pl.ds(r0, block_r), :]          # (block_r, 2) f32
    c0 = c[:, 0:1]                            # weight of the bent term
    c1 = c[:, 1:2]                            # weight of the identity term

    x = x_ref[...].astype(jnp.float32)
    y = x * x + four_b2                       # y >= 4*b*b
    if use_rsqrt:
        # b != 0 => y > 0, so sqrt(y) == y * rsqrt(y).  Keeps the single EUP
        # slot cheap (one vrsqrt + one vmul) on v5e; neutral on v6e/v7x.
        bent = y * lax.rsqrt(y) - two_b
    else:
        bent = jnp.sqrt(y) - two_b            # b == 0: y may be exactly 0
    o_ref[...] = (c0 * bent + c1 * x).astype(o_ref.dtype)


def bent_ident_par(x, a, b=1.0, *, donate_x=False):
    """BentIdent parametric activation.

    x: (N, C, H, W) float array
    a: per-channel slope; scalar, (C,), (1,C,1,1) or (N,C,1,1)
    b: python float (module hyperparameter)
    """
    N, C, H, W = x.shape
    out_dtype = x.dtype

    # Tiny per-row coefficient table, computed once in f32 (glue, not hot path).
    a_arr = jnp.asarray(a, jnp.float32)
    if a_arr.ndim == 1 and a_arr.shape[0] == C:
        a_arr = a_arr.reshape(1, C, 1, 1)
    a_rows = jnp.broadcast_to(a_arr, (N, C, 1, 1)).reshape(N * C, 1)
    coeff = jnp.concatenate([(1.0 - a_rows) * 0.5,
                             (1.0 + a_rows) * 0.5], axis=1)  # (R, 2)

    b = float(b)
    four_b2 = 4.0 * b * b
    two_b = 2.0 * b
    use_rsqrt = (b != 0.0)

    R, L = N * C, H * W
    x2d = jnp.reshape(x, (R, L))  # channel-major rows, lane-dense columns
    itemsize = x2d.dtype.itemsize

    block_r, block_l = _pick_block(R, L, itemsize, _target_block_bytes())
    grid_r = pl.cdiv(R, block_r)
    grid_l = pl.cdiv(L, block_l)

    # Pad the coefficient table so in-kernel pl.ds slices never go OOB when
    # R is not a multiple of block_r (padded rows feed masked output rows).
    R_pad = grid_r * block_r
    if R_pad > R:
        coeff = jnp.pad(coeff, ((0, R_pad - R), (0, 0)))

    x_spec = pl.BlockSpec((block_r, block_l), lambda i, j: (i, j))
    c_spec = pl.BlockSpec((R_pad, 2), lambda i, j: (0, 0))  # whole table, resident
    out_spec = pl.BlockSpec((block_r, block_l), lambda i, j: (i, j))

    kernel = functools.partial(_bent_ident_kernel, four_b2=four_b2,
                               two_b=two_b, block_r=block_r,
                               use_rsqrt=use_rsqrt)

    out2d = pl.pallas_call(
        kernel,
        out_shape=jax.ShapeDtypeStruct((R, L), out_dtype),
        grid_spec=pltpu.PrefetchScalarGridSpec(
            num_scalar_prefetch=0,
            grid=(grid_r, grid_l),
            in_specs=[x_spec, c_spec],
            out_specs=out_spec,
        ),
        compiler_params=pltpu.CompilerParams(
            dimension_semantics=("parallel", "parallel"),
            vmem_limit_bytes=32 << 20,
        ),
        cost_estimate=pl.CostEstimate(
            flops=7 * R * L,
            transcendentals=R * L,
            bytes_accessed=2 * R * L * itemsize + 8 * R_pad,
        ),
        input_output_aliases=({0: 0} if donate_x else {}),
    )(x2d, coeff)

    return jnp.reshape(out2d, (N, C, H, W))


def _reference(x, a, b=1.0):
    return (1.0 - a) / 2.0 * (jnp.sqrt(x * x + 4.0 * b * b) - 2.0 * b) \
        + (1.0 + a) / 2.0 * x


if __name__ == "__main__":
    key = jax.random.PRNGKey(0)
    kx, ka = jax.random.split(key)

    N, C, H, W = 2, 4, 16, 16
    x = jax.random.normal(kx, (N, C, H, W), dtype=jnp.float32)
    # per-channel parametric slope, broadcastable against NCHW x
    a = jax.random.uniform(ka, (1, C, 1, 1), dtype=jnp.float32)

    b = 1.0
    out = jax.block_until_ready(bent_ident_par(x, a, b))

    ref = _reference(x, a, b)
    assert out.shape == x.shape and out.dtype == x.dtype
    assert jnp.allclose(out, ref, atol=1e-5, rtol=1e-5), "mismatch vs reference"

    print("KERNEL_OK")
</pallas_src>

<mosaic_0001>
module attributes {stable_mosaic.version = 11 : i64} {
  func.func @_bent_ident_kernel(%arg0: i32, %arg1: i32, %arg2: memref<8x128xf32, #tpu.memory_space<vmem>>, %arg3: memref<8x2xf32, #tpu.memory_space<vmem>>, %arg4: memref<8x128xf32, #tpu.memory_space<vmem>>) attributes {dimension_semantics = [#tpu.dimension_semantics<parallel>, #tpu.dimension_semantics<parallel>], iteration_bounds = array<i64: 1, 2>, scalar_prefetch = 0 : i64, scratch_operands = 0 : i64, tpu.core_type = #tpu.core_type<tc>, window_params = [{transform_indices = @transform_0, window_bounds = array<i64: 8, 128>}, {pipeline_mode = #tpu.pipeline_mode<synchronous>, transform_indices = @transform_1, window_bounds = array<i64: 8, 2>}, {transform_indices = @transform_2, window_bounds = array<i64: 8, 128>}]} {
    %c8_i32 = arith.constant 8 : i32
    %0 = arith.muli %arg0, %c8_i32 : i32
    %1 = tpu.assume_multiple %0, 8 : i32
    %2 = arith.index_cast %1 : i32 to index
    %c0 = arith.constant 0 : index
    %3 = vector.load %arg3[%2, %c0] : memref<8x2xf32, #tpu.memory_space<vmem>>, vector<8x2xf32>
    %4 = vector.extract_strided_slice %3 {offsets = [0, 0], sizes = [8, 1], strides = [1, 1]} : vector<8x2xf32> to vector<8x1xf32>
    %5 = vector.extract_strided_slice %3 {offsets = [0, 1], sizes = [8, 1], strides = [1, 1]} : vector<8x2xf32> to vector<8x1xf32>
    %c0_0 = arith.constant 0 : index
    %c0_1 = arith.constant 0 : index
    %6 = vector.load %arg2[%c0_0, %c0_1] : memref<8x128xf32, #tpu.memory_space<vmem>>, vector<8x128xf32>
    %7 = arith.mulf %6, %6 : vector<8x128xf32>
    %cst = arith.constant 4.000000e+00 : f32
    %8 = vector.broadcast %cst : f32 to vector<8x128xf32>
    %9 = arith.addf %7, %8 : vector<8x128xf32>
    %10 = math.rsqrt %9 : vector<8x128xf32>
    %11 = arith.mulf %9, %10 : vector<8x128xf32>
    %cst_2 = arith.constant 2.000000e+00 : f32
    %12 = vector.broadcast %cst_2 : f32 to vector<8x128xf32>
    %13 = arith.subf %11, %12 : vector<8x128xf32>
    %14 = vector.broadcast %4 : vector<8x1xf32> to vector<8x128xf32>
    %15 = arith.mulf %14, %13 : vector<8x128xf32>
    %16 = vector.broadcast %5 : vector<8x1xf32> to vector<8x128xf32>
    %17 = arith.mulf %16, %6 : vector<8x128xf32>
    %18 = arith.addf %15, %17 : vector<8x128xf32>
    %c0_3 = arith.constant 0 : index
    %c0_4 = arith.constant 0 : index
    %19 = vector.load %arg4[%c0_3, %c0_4] : memref<8x128xf32, #tpu.memory_space<vmem>>, vector<8x128xf32>
    tpu.vector_store %arg4[%c0_3, %c0_4], %18 {strides = array<i32>} : memref<8x128xf32, #tpu.memory_space<vmem>>, vector<8x128xf32>,
    return
  }
  func.func @transform_0(%arg0: i32, %arg1: i32) -> (i32, i32) {
    %c0_i32 = arith.constant 0 : i32
    return %arg0, %arg1 : i32, i32
  }
  func.func @transform_1(%arg0: i32, %arg1: i32) -> (i32, i32) {
    %c0_i32 = arith.constant 0 : i32
    %c0_i32_0 = arith.constant 0 : i32
    %c0_i32_1 = arith.constant 0 : i32
    return %c0_i32, %c0_i32_0 : i32, i32
  }
  func.func @transform_2(%arg0: i32, %arg1: i32) -> (i32, i32) {
    %c0_i32 = arith.constant 0 : i32
    return %arg0, %arg1 : i32, i32
  }
}

</mosaic_0001>

<bundles_post_ra>
// kernel: tpu_custom_call.1
= control target key start
LH: loop header
LB: loop body
LE: loop exit
PB: predicated region body
PF: predicated region fallthrough
CT: control target
= control target key end

     0   :  { %7 = vsyncpa [#allocation3], 0  ;;  %s689_s0 = inlined_call_operand.hbm [shape: f32[8,256], index: 0, kind: input, shape index: {}]   ;;  %s690_s1 = inlined_call_operand.vmem [shape: f32[8,2], index: 1, kind: input, shape index: {}]   ;;  %s691_s2 = inlined_call_operand.hbm [shape: f32[8,256], index: 2, kind: output, shape index: {}]  }
   0x1   :  { %9 = vsyncpa [#allocation3 + $0x1], 0 }
   0x2   :  { %10 = vsyncpa [#allocation4], 0 }
   0x3   :  { %12 = vsyncpa [#allocation4 + $0x1], 0  ;;  %s514_s9 = smov 0   ;;  %s516_s10 = smov 0  }
   0x4   :  { %s518_s11 = smov 0   ;;  %s520_s12 = smov 0  }
   0x5   :  { %s522_s13 = smov 0   ;;  %s524_s14 = smov 0  }
   0x6 LB: > { %s299_s15 = sadd.s32 4294967295, %s493_s14   ;;  %s300_s16 = sadd.s32 4294967294, %s493_s14   ;;  %s493_s14 = sphi %s524_s14, %s18_s14   ;;  %s489_s13 = sphi %s522_s13, %s707_s13   ;;  %s485_s12 = sphi %s520_s12, %s706_s12   ;;  %s481_s11 = sphi %s518_s11, %s705_s11   ;;  %s477_s10 = sphi %s516_s10, %s704_s10   ;;  %s473_s9 = sphi %s514_s9, %s703_s9  }
   0x7   : > { %s27_s17 = sadd.s32 1, %s489_s13  ;;  %s39_s18 = sadd.s32 1, %s481_s11 }
   0x8   : > { %p28_p0 = scmp.ge.s32.totalorder %s27_s17, 2  ;;  %p46_p1 = scmp.ne.s32.totalorder %s481_s11, %s477_s10 }
   0x9   : > { %p47_p2 = scmp.eq.s32.totalorder %s493_s14, 0  ;;  %p52_p3 = scmp.ne.s32.totalorder %s477_s10, %s473_s9 }
   0xa   : > { %s709_s17 = smov (%p28_p0, %s27_s17), 0  ;;  %p53_p5 = scmp.eq.s32.totalorder %s299_s15, 0 }
   0xb   : > { %p555_p4 = por %p47_p2, %p46_p1  ;;  %s35_s20 = ssub.s32 %s489_s13, %s709_s17 }
   0xc   : > { %p99_p6 = scmp.eq.s32.totalorder %s299_s15, 1  ;;  %p37_p7 = scmp.eq.s32.totalorder %s35_s20, 0 }
   0xd   : > { %p561_p8 = por %p53_p5, %p52_p3  ;;  %p105_p10 = scmp.eq.s32.totalorder %s300_s16, 1 }
   0xe   : > { %p565_p9 = por %p99_p6, %p46_p1  ;;  %p325_p13 = scmp.lt.s32.totalorder %s493_s14, 2 }
   0xf   : > { %s570_s23 = scalar_select %p37_p7, %s481_s11, %s39_s18  }
  0x10   : > { %s695_s22 = scalar_select %p565_p9, 1, 0 }
  0x11   : > { %p572_p11 = por %p105_p10, %p52_p3  ;;  %s128_s25 = sand.u32 1, %s481_s11  }
  0x12   : > { %s303_s26 = sshll.u32 %s128_s25, 3  ;;  %s304_s27 = sshll.u32 %s489_s13, 7 }
  0x13   : > { %s696_s24 = scalar_select %p572_p11, 1, 0 }
  0x14   : > { %s583_s30 = scalar_lea.hbm %s689_s0, %s304_s27  ;;  %s132_s3 = scalar_lea.vmem [#allocation2], %s303_s26 }
  0x15   : > { %s141_s4 = sshll.u32 %s132_s3, 4  ;;  %p589_p0 = pnand %p325_p13, %p555_p4  ;;  %s585_s4 = int_to_ptr.vmem [resolvable:$true] %s141_s4 }
  0x16   : > { %s129_s6 = scalar_lea.sflag [#allocation3], %s128_s25  ;;  %s381_s7 = scalar_lea.hbm %s583_s30, 128 }
  0x17   : > { %p382_p3 = scmp.ne.s32.totalorder %s583_s30, %s381_s7  ;;  %p383_p5 = pneg %p589_p0 }
  0x18   : > { %s386_s16 = scalar_lea.hbm %s689_s0, 256  ;;  %p387_p4 = scmp.lt.u32.totalorder %s583_s30, %s689_s0 }
  0x19   : > { %p384_p6 = pnand %p383_p5, %p382_p3  ;;  %p388_p10 = scmp.lt.u32.totalorder %s386_s16, %s381_s7 }
  0x1a   : > { %p390_p12 = scmp.lt.u32.totalorder %s381_s7, %s583_s30 }
  0x1b   : > { %p385_p7 = pneg %p384_p6  ;;  %p389_p13 = por %p388_p10, %p387_p4 }
  0x1d   : > { %p391_p1 = por %p390_p12, %p389_p13 }
  0x1f   : > { %p392_p2 = pnand %p391_p1, %p385_p7 }
  0x21   : > { %395 = shalt.err (!%p392_p2)
}
  0x22   : > { %s396_s20 = scalar_lea.vmem %s585_s4, 128  ;;  %s495_s25 = smov [#allocation2]  }
  0x23   : > { %p397_p3 = scmp.ne.s32.totalorder %s585_s4, %s396_s20  ;;  %s401_s26 = sshll.u32 %s495_s25, 4  ;;  %s402_s26 = int_to_ptr.vmem [resolvable:$false] %s401_s26 }
  0x24   : > { %s403_s27 = scalar_lea.vmem %s402_s26, 256  ;;  %p404_p9 = scmp.lt.s32.totalorder %s585_s4, %s402_s26 }
  0x25   : > { %p399_p6 = pnand %p397_p3, %p383_p5  ;;  %p405_p4 = scmp.lt.s32.totalorder %s403_s27, %s396_s20 }
  0x27   : > { %p400_p11 = pneg %p399_p6  ;;  %p406_p10 = por %p405_p4, %p404_p9 }
  0x29   : > { %p407_p12 = pnand %p406_p10, %p400_p11 }
  0x2b   : > { %410 = shalt.err (!%p407_p12)
}
  0x2c   : > { %320 = dma.hbm_to_vmem [thread:$0]  (!%p589_p0), %s583_s30, 128, %s585_s4, %s129_s6  }
  0x2d   : > { %p698_p1 = scmp.lt.s32.totalorder %s493_s14, 3  ;;  %p699_p2 = scmp.ge.s32.totalorder %s493_s14, 1 }
  0x2f   : > { %p147_p5 = pnand %p699_p2, %p698_p1 }
  0x30   : > { %s625_s28 = sand.u32 (!%p147_p5), 1, %s477_s10  }
  0x31   : > { %150 = sbr.rel (%p147_p5) target bundleno = 210 (0xd2), region = 28  ;;  %s306_s29 = sshll.u32 (!%p147_p5), %s625_s28, 3 }
  0x32   : > { %s153_s3 = scalar_lea.sflag (!%p147_p5), [#allocation3], %s625_s28  ;;  %s156_s7 = scalar_lea.vmem (!%p147_p5), [#allocation2], %s306_s29 }
  0x38   : > { %464 = dma.done.wait (%p561_p8), %s153_s3, 128  }
  0x39   : > { %466 = vsyncadd (%p561_p8), %s153_s3, 4294967168  ;;  %v496_v0 = vmov 0   ;;  %v179_v1 = vld [vmem:[%s690_s1] sm:$0xff]  ;;  %v497_v2 = vmov 1   ;;  %s310_s21 = sshll.u32 %s485_s12, 7  ;;  %s176_s5 = scalar_lea.vmem [#allocation5], %s306_s29 }
  0x3a   : > { %377 = vset.pattern.permute.xlu0 %v496_v0  ;;  %v180_v3 = vld [vmem:[%s156_s7] sm:$0xff]  ;;  %s215_s6 = sshll.u32 %s176_s5, 4  ;;  %s640_s16 = scalar_lea.hbm %s691_s2, %s310_s21  ;;  %s642_s6 = int_to_ptr.vmem [resolvable:$true] %s215_s6 }
  0x3b   : > { %188 = vperm.xlu0 %377, %v179_v1   ;;  %v181_v4 = vmul.f32 %v180_v3, %v180_v3  ;;  %s200_s18 = scalar_lea.sflag [#allocation4], %s625_s28  ;;  %s411_s19 = scalar_lea.vmem %s642_s6, 128 }
  0x3c   : > { %p412_p8 = scmp.ne.s32.totalorder %s642_s6, %s411_s19  ;;  %p700_p9 = scmp.ne.s32.totalorder %s695_s22, 0 }
  0x3d   : > { %v182_v5 = vadd.f32 4.0, %v181_v4  ;;  %s498_s12 = smov [#allocation5]  }
  0x3e   : > { %p413_p11 = pnand %p412_p8, %p700_p9  ;;  %s415_s20 = sshll.u32 %s498_s12, 4  ;;  %s416_s20 = int_to_ptr.vmem [resolvable:$false] %s415_s20 }
  0x3f   : > { %378 = vset.pattern.permute.xlu0 %v497_v2  ;;  %379 = vrsqrt.f32 %v182_v5  ;;  %s417_s25 = scalar_lea.vmem %s416_s20, 256  ;;  %p418_p7 = scmp.lt.s32.totalorder %s642_s6, %s416_s20 }
  0x40   : > { %193 = vperm.xlu0 %378, %v179_v1   ;;  %p414_p0 = pneg %p413_p11  ;;  %p419_p13 = scmp.lt.s32.totalorder %s417_s25, %s411_s19 }
  0x42   : > { %p420_p3 = por %p419_p13, %p418_p7 }
  0x44   : > { %p421_p6 = pnand %p420_p3, %p414_p0 }
  0x49   : > { %v380_v6 = vpop.eup %379 }
  0x4a   : > { %v184_v7 = vmul.f32 %v380_v6, %v182_v5 }
  0x4c   : > { %v308_v9 = vadd.f32 -2.0, %v184_v7 }
  0xba   : > { %v189_v8 = vpop.permute.xlu0 %188 }
  0xbb   : > { %v191_v11 = vmul.f32 %v308_v9, %v189_v8 }
  0xbf   : > { %v194_v10 = vpop.permute.xlu0 %193 }
  0xc0   : > { %v196_v12 = vmul.f32 %v194_v10, %v180_v3 }
  0xc2   : > { %v197_v13 = vadd.f32 %v196_v12, %v191_v11 }
  0xc4   : > { %198 = vst [vmem:[%s176_s5] sm:$0xff] %v197_v13 }
  0xc5   : > { %424 = shalt.err (!%p421_p6)
}
  0xc6   : > { %s425_s26 = scalar_lea.hbm %s640_s16, 128  ;;  %s429_s29 = scalar_lea.hbm %s691_s2, 256 }
  0xc7   : > { %p426_p4 = scmp.ne.s32.totalorder %s640_s16, %s425_s26  ;;  %p430_p1 = scmp.lt.u32.totalorder %s640_s16, %s691_s2 }
  0xc8   : > { %p431_p2 = scmp.lt.u32.totalorder %s429_s29, %s425_s26  ;;  %p433_p8 = scmp.lt.u32.totalorder %s425_s26, %s640_s16 }
  0xc9   : > { %p427_p10 = pnand %p426_p4, %p700_p9 }
  0xca   : > { %p432_p5 = por %p431_p2, %p430_p1 }
  0xcb   : > { %p428_p12 = pneg %p427_p10 }
  0xcc   : > { %p434_p11 = por %p433_p8, %p432_p5 }
  0xce   : > { %p435_p0 = pnand %p434_p11, %p428_p12 }
  0xd0   : > { %438 = shalt.err (!%p435_p0)
}
  0xd1   : > { %315 = dma.vmem_to_hbm [thread:$0]  (%p700_p9), %s642_s6, 128, %s640_s16, %s200_s18  }
  0xd2 PF: > { %s227_s30 = sand.u32 1, %s473_s9   ;;  %p701_p7 = scmp.ne.s32.totalorder %s696_s24, 0 }
  0xd3   : > { %p702_p13 = scmp.ge.s32.totalorder %s493_s14, 2  ;;  %s228_s4 = scalar_lea.sflag [#allocation4], %s227_s30 }
  0xd5   : > { %p322_p3 = pnand %p702_p13, %p701_p7 }
  0xd7   : > { %468 = dma.done.wait (!%p322_p3), %s228_s4, 128  }
  0xd8   : > { %470 = vsyncadd (!%p322_p3), %s228_s4, 4294967168  ;;  %s18_s14 = sadd.s32 1, %s493_s14   ;;  %s703_s9 = smov %s477_s10 }
  0xd9   : > { %p15_p6 = scmp.ge.s32.totalorder %s18_s14, 4   ;;  %s704_s10 = smov %s481_s11 }
  0xda   : > { %s705_s11 = smov %s570_s23  ;;  %s706_s12 = smov %s489_s13 }
  0xdb   : > { %s707_s13 = smov %s709_s17  ;;  %17 = sbr.rel (!%p15_p6) target bundleno = 6 (0x6), region = 74 }
  0xe2   :  { %233 = vsyncpa [#allocation3], 1 }
  0xe3   :  { %235 = vsyncpa [#allocation3 + $0x1], 1 }
  0xe4   :  { %236 = vsyncpa [#allocation4], 1 }
  0xe5   :  { %238 = vsyncpa [#allocation4 + $0x1], 1 }

</bundles_post_ra>
